<compile_context>
chip_gen: v7x
topology: tpu7x:2x2x1
jax: 0.10.0
libtpu: 0.0.40
codegen_flags: <defaults>
</compile_context>

<pallas_src>
import functools

import jax
import jax.numpy as jnp
from jax.experimental import pallas as pl
from jax.experimental.pallas import tpu as pltpu


def mlp_softmax_kernel(x_ref, p_ref, out_ref):
    """Fused 3-layer MLP + 2-class softmax on one batch tile (batch on lanes).

    x_ref:   (4, TB)   input tile, batch on lanes (any float dtype)
    p_ref:   (32, 128) packed parameter slab (constant block -> VMEM resident)
    out_ref: (2, TB)   class probabilities (row 0 = class 0, row 1 = class 1)
    """
    w_dtype = p_ref.dtype
    x = x_ref[...].astype(w_dtype)                     # (4, TB), bf16 by default

    w1 = p_ref[0:16, 0:4]                              # (16, 4)
    b1 = p_ref[0:16, 4:5].astype(jnp.float32)          # (16, 1)
    w2 = p_ref[16:24, 0:16]                            # (8, 16)
    b2 = p_ref[16:24, 16:17].astype(jnp.float32)       # (8, 1)
    w3 = p_ref[24:26, 0:8]                             # (2, 8)
    b3 = p_ref[24:26, 8:9].astype(jnp.float32)         # (2, 1)

    # fc1 + relu -> (16, TB); low-precision MXU operands, f32 accumulation.
    h1 = jnp.maximum(
        jnp.dot(w1, x, preferred_element_type=jnp.float32) + b1, 0.0)
    h1 = h1.astype(w_dtype)
    # fc2 + relu -> (8, TB)
    h2 = jnp.maximum(
        jnp.dot(w2, h1, preferred_element_type=jnp.float32) + b2, 0.0)
    h2 = h2.astype(w_dtype)
    # fc3 -> (2, TB) logits in f32
    logits = jnp.dot(w3, h2, preferred_element_type=jnp.float32) + b3

    # 2-class softmax in logistic form (numerically stable, purely per-column,
    # no cross-lane reductions, no concatenate):
    #   p1 = 1 / (1 + exp(l0 - l1)),  p0 = 1 - p1
    e = jnp.exp(logits[0:1, :] - logits[1:2, :])       # EUP
    p1 = pl.reciprocal(1.0 + e)                        # exact reciprocal (EUP)
    out_ref[1:2, :] = p1.astype(out_ref.dtype)
    out_ref[0:1, :] = (1.0 - p1).astype(out_ref.dtype)


def _round_up(x, m):
    return ((x + m - 1) // m) * m


_MIN_LANES_PER_STEP = 16 * 1024  # keep each grid step's DMA >> ~0.35us step cost


def _pick_tile(batch_lanes, lane_tile, min_steps):
    """Static (trace-time) lane-tile choice.

    - never larger than needed (round_up(batch, 128)) or than `lane_tile`
    - once the batch is big enough that `min_steps` tiles would each still move
      >= _MIN_LANES_PER_STEP lanes, split so the grid has >= min_steps steps
      (the "parallel" axis then shards across both v7x TensorCores).
    """
    lane_tile = max(128, _round_up(int(lane_tile), 128))
    full = _round_up(int(batch_lanes), 128)
    tile = min(lane_tile, full)
    steps = -(-full // tile)  # cdiv
    if steps < min_steps and full >= min_steps * _MIN_LANES_PER_STEP:
        tile = _round_up(-(-full // min_steps), 128)
    return tile


@functools.partial(jax.jit, static_argnames=("lane_tile", "out_dtype"))
def graduation_predictor_cols(xT, param_slab, *, lane_tile=64 * 1024,
                              out_dtype=jnp.float32):
    """Fast path.  xT: (4, B), features-major (batch on lanes), any float dtype
    (hand over bfloat16 on v5e to halve input HBM traffic).  Returns (2, B)
    probabilities in `out_dtype`.  No transpose and no full-array pad in HBM.
    """
    assert xT.shape[0] == 4, xT.shape
    B = xT.shape[1]

    # Tiny-batch safety pad only (B below one vreg lane width).  Large batches
    # are handled raggedly by the grid with no extra HBM pass.
    B_eff = B
    if B < 128:
        xT = jnp.pad(xT, ((0, 0), (0, 128 - B)))
        B_eff = 128

    tile = _pick_tile(B_eff, lane_tile, min_steps=2)
    grid = (pl.cdiv(B_eff, tile),)

    outT = pl.pallas_call(
        mlp_softmax_kernel,
        out_shape=jax.ShapeDtypeStruct((2, B_eff), out_dtype),
        grid=grid,
        in_specs=[
            pl.BlockSpec((4, tile), lambda i: (0, i)),    # batch tile
            pl.BlockSpec((32, 128), lambda i: (0, 0)),    # params: VMEM resident
        ],
        out_specs=pl.BlockSpec((2, tile), lambda i: (0, i)),
        compiler_params=pltpu.CompilerParams(
            dimension_semantics=("parallel",),            # megacore-shardable
            vmem_limit_bytes=32 * 1024 * 1024,            # headroom for 64K tiles
        ),
    )(xT, param_slab)

    return outT if B_eff == B else outT[:, :B]


@functools.partial(jax.jit, static_argnames=("lane_tile",))
def graduation_predictor(x, param_slab, *, lane_tile=64 * 1024):
    """PyTorch-layout wrapper: x (B, 4) -> (B, 2) softmax probabilities.

    The two transposes here are pure layout plumbing (each an extra HBM pass);
    producers that can supply (4, B) / accept (2, B) should call
    graduation_predictor_cols directly.
    """
    return graduation_predictor_cols(x.T, param_slab, lane_tile=lane_tile).T


def pack_params(params, dtype=jnp.bfloat16):
    """Pack (W1,b1,W2,b2,W3,b3) [PyTorch (out,in) layout] into one (32,128) slab.

    Default bfloat16 (MXU operands in bf16; accumulation stays f32 in-kernel).
    Use dtype=jnp.float32 for an exact-to-f32 path.
    """
    w1, b1, w2, b2, w3, b3 = params
    slab = jnp.zeros((32, 128), jnp.float32)
    slab = slab.at[0:16, 0:4].set(w1.astype(jnp.float32))
    slab = slab.at[0:16, 4:5].set(b1.reshape(16, 1).astype(jnp.float32))
    slab = slab.at[16:24, 0:16].set(w2.astype(jnp.float32))
    slab = slab.at[16:24, 16:17].set(b2.reshape(8, 1).astype(jnp.float32))
    slab = slab.at[24:26, 0:8].set(w3.astype(jnp.float32))
    slab = slab.at[24:26, 8:9].set(b3.reshape(2, 1).astype(jnp.float32))
    return slab.astype(dtype)


def init_params(key):
    """Deterministic init matching nn.Linear: weights (out, in), biases (out,)."""
    ks = jax.random.split(key, 6)

    def uniform(k, shape, fan_in):
        bound = 1.0 / jnp.sqrt(fan_in)
        return jax.random.uniform(k, shape, jnp.float32, -bound, bound)

    w1 = uniform(ks[0], (16, 4), 4.0)
    b1 = uniform(ks[1], (16,), 4.0)
    w2 = uniform(ks[2], (8, 16), 16.0)
    b2 = uniform(ks[3], (8,), 16.0)
    w3 = uniform(ks[4], (2, 8), 8.0)
    b3 = uniform(ks[5], (2,), 8.0)
    return (w1, b1, w2, b2, w3, b3)


def reference(x, params):
    """Pure-JAX reference identical to the PyTorch forward."""
    w1, b1, w2, b2, w3, b3 = params
    h1 = jnp.maximum(x @ w1.T + b1, 0.0)
    h2 = jnp.maximum(h1 @ w2.T + b2, 0.0)
    return jax.nn.softmax(h2 @ w3.T + b3, axis=1)


if __name__ == "__main__":
    key = jax.random.PRNGKey(0)
    kx1, kx2, kp = jax.random.split(key, 3)

    params = init_params(kp)
    slab_f32 = pack_params(params, dtype=jnp.float32)   # exact-check path
    slab_bf16 = pack_params(params)                     # default perf path (bf16)

    # 1) Tiny batch, PyTorch (B, 4) layout, f32 weights: exact check.
    B = 8
    x = jax.random.normal(kx1, (B, 4), dtype=jnp.float32)
    out = jax.block_until_ready(graduation_predictor(x, slab_f32))
    ref = reference(x, params)
    assert out.shape == (B, 2)
    assert jnp.allclose(out, ref, atol=1e-5, rtol=1e-5), (out, ref)
    assert jnp.allclose(jnp.sum(out, axis=1), 1.0, atol=1e-6)

    # 2) Ragged batch (not a multiple of the tile), multi-step parallel grid,
    #    feature-major fast path, bf16 matmul operands.
    B2 = 1000
    x2 = jax.random.normal(kx2, (B2, 4), dtype=jnp.float32)
    out2T = jax.block_until_ready(
        graduation_predictor_cols(x2.T, slab_bf16, lane_tile=256))
    ref2 = reference(x2, params)
    assert out2T.shape == (2, B2)
    assert jnp.allclose(out2T.T, ref2, atol=2e-2, rtol=2e-2), \
        float(jnp.max(jnp.abs(out2T.T - ref2)))
    assert jnp.allclose(jnp.sum(out2T, axis=0), 1.0, atol=1e-5)

    # 3) Same ragged batch through the default (64K-lane) tile path and the
    #    PyTorch layout wrapper, bf16 weights.
    out3 = jax.block_until_ready(graduation_predictor(x2, slab_bf16))
    assert out3.shape == (B2, 2)
    assert jnp.allclose(out3, ref2, atol=2e-2, rtol=2e-2)
    assert jnp.allclose(jnp.sum(out3, axis=1), 1.0, atol=1e-5)

    print("KERNEL_OK")
</pallas_src>

<mosaic_0001>
module attributes {stable_mosaic.version = 11 : i64} {
  func.func @mlp_softmax_kernel(%arg0: i32, %arg1: memref<4x128xf32, #tpu.memory_space<vmem>>, %arg2: memref<32x128xf32, #tpu.memory_space<vmem>>, %arg3: memref<2x128xf32, #tpu.memory_space<vmem>>) attributes {dimension_semantics = [#tpu.dimension_semantics<parallel>], iteration_bounds = array<i64: 1>, scalar_prefetch = 0 : i64, scratch_operands = 0 : i64, tpu.core_type = #tpu.core_type<tc>, window_params = [{transform_indices = @transform_0, window_bounds = array<i64: 4, 128>}, {pipeline_mode = #tpu.pipeline_mode<synchronous>, transform_indices = @transform_1, window_bounds = array<i64: 32, 128>}, {transform_indices = @transform_2, window_bounds = array<i64: 2, 128>}]} {
    %c0 = arith.constant 0 : index
    %c0_0 = arith.constant 0 : index
    %0 = vector.load %arg1[%c0, %c0_0] : memref<4x128xf32, #tpu.memory_space<vmem>>, vector<4x128xf32>
    %c0_1 = arith.constant 0 : index
    %c0_2 = arith.constant 0 : index
    %1 = vector.load %arg2[%c0_1, %c0_2] : memref<32x128xf32, #tpu.memory_space<vmem>>, vector<16x4xf32>
    %c0_3 = arith.constant 0 : index
    %c4 = arith.constant 4 : index
    %2 = vector.load %arg2[%c0_3, %c4] : memref<32x128xf32, #tpu.memory_space<vmem>>, vector<16x1xf32>
    %c16 = arith.constant 16 : index
    %c0_4 = arith.constant 0 : index
    %3 = vector.load %arg2[%c16, %c0_4] : memref<32x128xf32, #tpu.memory_space<vmem>>, vector<8x16xf32>
    %c16_5 = arith.constant 16 : index
    %c16_6 = arith.constant 16 : index
    %4 = vector.load %arg2[%c16_5, %c16_6] : memref<32x128xf32, #tpu.memory_space<vmem>>, vector<8x1xf32>
    %c24 = arith.constant 24 : index
    %c0_7 = arith.constant 0 : index
    %5 = vector.load %arg2[%c24, %c0_7] : memref<32x128xf32, #tpu.memory_space<vmem>>, vector<2x8xf32>
    %c24_8 = arith.constant 24 : index
    %c8 = arith.constant 8 : index
    %6 = vector.load %arg2[%c24_8, %c8] : memref<32x128xf32, #tpu.memory_space<vmem>>, vector<2x1xf32>
    %cst = arith.constant dense<0.000000e+00> : vector<16x128xf32>
    %7 = tpu.matmul %1, %0, %cst {dimension_numbers = #tpu.dot_dimension_numbers<[1], [0], [0], [1], [0, 0, 1, 1], [], []>} : vector<16x4xf32>, vector<4x128xf32>, vector<16x128xf32> -> vector<16x128xf32>
    %8 = vector.broadcast %2 : vector<16x1xf32> to vector<16x128xf32>
    %9 = arith.addf %7, %8 : vector<16x128xf32>
    %cst_9 = arith.constant 0.000000e+00 : f32
    %10 = vector.broadcast %cst_9 : f32 to vector<16x128xf32>
    %11 = arith.maximumf %9, %10 : vector<16x128xf32>
    %cst_10 = arith.constant dense<0.000000e+00> : vector<8x128xf32>
    %12 = tpu.matmul %3, %11, %cst_10 {dimension_numbers = #tpu.dot_dimension_numbers<[1], [0], [0], [1], [0, 0, 1, 1], [], []>} : vector<8x16xf32>, vector<16x128xf32>, vector<8x128xf32> -> vector<8x128xf32>
    %13 = vector.broadcast %4 : vector<8x1xf32> to vector<8x128xf32>
    %14 = arith.addf %12, %13 : vector<8x128xf32>
    %cst_11 = arith.constant 0.000000e+00 : f32
    %15 = vector.broadcast %cst_11 : f32 to vector<8x128xf32>
    %16 = arith.maximumf %14, %15 : vector<8x128xf32>
    %cst_12 = arith.constant dense<0.000000e+00> : vector<2x128xf32>
    %17 = tpu.matmul %5, %16, %cst_12 {dimension_numbers = #tpu.dot_dimension_numbers<[1], [0], [0], [1], [0, 0, 1, 1], [], []>} : vector<2x8xf32>, vector<8x128xf32>, vector<2x128xf32> -> vector<2x128xf32>
    %18 = vector.broadcast %6 : vector<2x1xf32> to vector<2x128xf32>
    %19 = arith.addf %17, %18 : vector<2x128xf32>
    %20 = vector.extract_strided_slice %19 {offsets = [0, 0], sizes = [1, 128], strides = [1, 1]} : vector<2x128xf32> to vector<1x128xf32>
    %21 = vector.extract_strided_slice %19 {offsets = [1, 0], sizes = [1, 128], strides = [1, 1]} : vector<2x128xf32> to vector<1x128xf32>
    %22 = arith.subf %20, %21 : vector<1x128xf32>
    %23 = math.exp %22 : vector<1x128xf32>
    %cst_13 = arith.constant 1.000000e+00 : f32
    %24 = vector.broadcast %cst_13 : f32 to vector<1x128xf32>
    %25 = arith.addf %24, %23 : vector<1x128xf32>
    %26 = tpu.reciprocal %25 : vector<1x128xf32> -> vector<1x128xf32>
    %c1 = arith.constant 1 : index
    %c0_14 = arith.constant 0 : index
    %27 = vector.load %arg3[%c1, %c0_14] : memref<2x128xf32, #tpu.memory_space<vmem>>, vector<1x128xf32>
    tpu.vector_store %arg3[%c1, %c0_14], %26 {strides = array<i32>} : memref<2x128xf32, #tpu.memory_space<vmem>>, vector<1x128xf32>,
    %cst_15 = arith.constant 1.000000e+00 : f32
    %28 = vector.broadcast %cst_15 : f32 to vector<1x128xf32>
    %29 = arith.subf %28, %26 : vector<1x128xf32>
    %c0_16 = arith.constant 0 : index
    %c0_17 = arith.constant 0 : index
    %30 = vector.load %arg3[%c0_16, %c0_17] : memref<2x128xf32, #tpu.memory_space<vmem>>, vector<1x128xf32>
    tpu.vector_store %arg3[%c0_16, %c0_17], %29 {strides = array<i32>} : memref<2x128xf32, #tpu.memory_space<vmem>>, vector<1x128xf32>,
    return
  }
  func.func @transform_0(%arg0: i32) -> (i32, i32) {
    %c0_i32 = arith.constant 0 : i32
    %c0_i32_0 = arith.constant 0 : i32
    return %c0_i32, %arg0 : i32, i32
  }
  func.func @transform_1(%arg0: i32) -> (i32, i32) {
    %c0_i32 = arith.constant 0 : i32
    %c0_i32_0 = arith.constant 0 : i32
    %c0_i32_1 = arith.constant 0 : i32
    return %c0_i32, %c0_i32_0 : i32, i32
  }
  func.func @transform_2(%arg0: i32) -> (i32, i32) {
    %c0_i32 = arith.constant 0 : i32
    %c0_i32_0 = arith.constant 0 : i32
    return %c0_i32, %arg0 : i32, i32
  }
}

</mosaic_0001>

<bundles_post_ra>
// kernel: graduation_predictor_cols.1
= control target key start
LH: loop header
LB: loop body
LE: loop exit
PB: predicated region body
PF: predicated region fallthrough
CT: control target
= control target key end

     0   :  { %7 = vsyncpa [#allocation3], 0  ;;  %s461_s0 = inlined_call_operand.vmem [shape: f32[4,128], index: 0, kind: input, shape index: {}]   ;;  %s462_s1 = inlined_call_operand.hbm [shape: f32[32,128], index: 1, kind: input, shape index: {}]   ;;  %s463_s2 = inlined_call_operand.hbm [shape: f32[2,128], index: 2, kind: output, shape index: {}]  }
   0x1   :  { %8 = vsyncpa [#allocation4], 0  ;;  %s409_s9 = smov [#allocation2]   ;;  %s361_s13 = scalar_lea.hbm %s462_s1, 512 }
   0x2   :  { %s16_s10 = sshll.u32 %s409_s9, 4  ;;  %p362_p0 = scmp.ne.s32.totalorder %s462_s1, %s361_s13  ;;  %s17_s10 = int_to_ptr.vmem [resolvable:$true] %s16_s10 }
   0x3   :  { %p365_p1 = scmp.lt.u32.totalorder %s361_s13, %s462_s1 }
   0x5   :  { %p367_p2 = pnand %p365_p1, %p362_p0 }
   0x7   :  { %370 = shalt.err (!%p367_p2)
}
   0x8   :  { %s371_s18 = scalar_lea.vmem %s17_s10, 512  ;;  %p376_p4 = scmp.lt.s32.totalorder %s17_s10, %s17_s10 }
   0x9   :  { %p372_p3 = scmp.ne.s32.totalorder %s17_s10, %s371_s18  ;;  %p377_p5 = scmp.lt.s32.totalorder %s371_s18, %s371_s18 }
   0xb   :  { %p378_p6 = por %p377_p5, %p376_p4 }
   0xd   :  { %p379_p7 = pnand %p378_p6, %p372_p3 }
   0xf   :  { %382 = shalt.err (!%p379_p7)
}
  0x10   :  { %s410_s19 = smov 128   ;;  %s411_s20 = smov 8  }
  0x11   :  { %22 = dma.hbm_to_vmem [thread:$0]  %s462_s1, 512, %s17_s10, [#allocation3], %s410_s19, %s410_s19, %s411_s20  }
  0x12   :  { %405 = dma.done.wait [#allocation3], 512  }
  0x13   :  { %406 = vsyncadd [#allocation3], 4294966784  ;;  %v412_v0 = vmov 4   ;;  %vm46_vm0 = vcmask 1043456   ;;  %vm41_vm1 = vcmask 31744   ;;  %v27_v2 = vld [vmem:[#allocation2] sm:$0xff] }
  0x14   :  { %353 = vset.pattern.permute.xlu0 %v412_v0  ;;  %v26_v1 = vld [vmem:[%s461_s0] sm:$0xf]  ;;  %v28_v3 = vld [vmem:[#allocation2 + $0x8] sm:$0xff]  ;;  %325 = vmatprep.mubr.msk.f32.mxu0 %vm41_vm1, %v27_v2  ;;  %v413_v4 = vmov 0.0|0.0   ;;  %vm414_vm2 = vmmov 0   ;;  %v415_v5 = vmov 0.0  }
  0x15   :  { %323 = vmatprep.subr.msk.mxu0 %vm46_vm0, %v26_v1  ;;  %33 = vperm.xlu0 %353, %v27_v2   ;;  %v29_v6 = vld [vmem:[#allocation2 + $0x10] sm:$0xff]  ;;  %v416_v7 = vmov 16   ;;  %vm132_vm3 = vcmask 130048   ;;  %v30_v17 = vld [vmem:[#allocation2 + $0x18] sm:$0x3]  ;;  %v417_v18 = vmov 8  }
  0x16   :  { %324 = vmatpush3.msk.msra.mxu0 %vm46_vm0, %v26_v1  ;;  %340 = vmatprep.subr.bf16.mxu1 %v413_v4  ;;  %vm211_vm4 = vcmask 64512   ;;  %s418_s0 = smov [#allocation5]  }
  0x17   :  { %326 = vmatmul.mubr.msk.f32.vlgmr.msra.gmra.mrb[0].mxu0 %vm41_vm1, %v28_v3  ;;  %332 = vmatprep.mubr.msk.f32.mxu1 %vm414_vm2, %v415_v5  ;;  %s301_s1 = sshll.u32 %s418_s0, 4  ;;  %s302_s1 = int_to_ptr.vmem [resolvable:$true] %s301_s1 }
  0x18   :  { %335 = vmatprep.subr.mxu0 %v415_v5  ;;  %337 = vmatprep.mubr.msk.f32.mxu0 %vm414_vm2, %v415_v5  ;;  %s383_s25 = scalar_lea.vmem %s302_s1, 32  ;;  %p388_p9 = scmp.lt.s32.totalorder %s302_s1, %s302_s1 }
  0x19   :  { %38 = vperm.xlu0 %353, %v28_v3   ;;  %354 = vset.pattern.permute.xlu1 %v416_v7  ;;  %p384_p8 = scmp.ne.s32.totalorder %s302_s1, %s383_s25  ;;  %p389_p10 = scmp.lt.s32.totalorder %s383_s25, %s383_s25 }
  0x1a   :  { %129 = vperm.xlu1 %354, %v29_v6  }
  0x1b   :  { %p390_p11 = por %p389_p10, %p388_p9 }
  0x1d   :  { %356 = vset.pattern.permute.xlu0 %v417_v18  ;;  %p391_p12 = pnand %p390_p11, %p384_p8 }
  0x1e   :  { %355 = vset.pattern.permute.xlu1 %v417_v18 }
  0x1f   :  { %208 = vperm.xlu1 %355, %v30_v17  }
  0x94   :  { %v34_v8 = vpop.permute.xlu0 %33 }
  0x98   :  { %v39_v9 = vpop.permute.xlu0 %38 }
  0x99   :  { %v130_v19 = vpop.permute.xlu1 %129 }
  0x9e   :  { %v209_v24 = vpop.permute.xlu1 %208 }
  0xea   :  { %v327_v10 = vpop.f32.mrb[0].mxu0 }
  0xeb   :  { %v122_v11 = vadd.f32 %v327_v10, %v39_v9  ;;  %v116_v12 = vpop.f32.mrb[1].mxu0 }
  0xec   :  { %v117_v13 = vadd.f32 %v116_v12, %v34_v8 }
  0xed   :  { %v126_v14 = vmax.f32 %v122_v11, 0.0 }
  0xee   :  { %v125_v15 = vmax.f32 %v117_v13, 0.0 }
  0xf0   :  { %v341_v16 = vpack.c.bf16 %v126_v14, %v125_v15 }
  0xf2   :  { %342 = vmatpush3.bf16.msra.mxu1 %v341_v16 }
  0xf5   :  { %333 = vmatmul.mubr.msk.f32.vlgmr.msra.gmra.mrb[0].mxu1 %vm132_vm3, %v29_v6 }
 0x1c8   :  { %v201_v20 = vpop.f32.mrb[0].mxu1 }
 0x1c9   :  { %v202_v21 = vadd.f32 %v201_v20, %v130_v19  ;;  %v334_v22 = vpop.f32.mrb[1].mxu1 }
 0x1cb   :  { %v205_v23 = vmax.f32 %v202_v21, 0.0 }
 0x1cd   :  { %336 = vmatpush3.msra.mxu0 %v205_v23 }
 0x1ce   :  { %338 = vmatmul.mubr.msk.f32.vlgmr.msra.gmra.mrb[2].mxu0 %vm211_vm4, %v30_v17 }
 0x2a1   :  { %v280_v25 = vpop.f32.mrb[2].mxu0 }
 0x2a2   :  { %v281_v26 = vadd.f32 %v280_v25, %v209_v24  ;;  %v339_v27 = vpop.f32.mrb[3].mxu0 }
 0x2a4   :  { %v285_v28 = vrot.slane %v281_v26, 1 }
 0x2a6   :  { %v287_v29 = vsub.f32 %v281_v26, %v285_v28 }
 0x2a8   :  { %v288_v30 = vmul.f32 1.442695, %v287_v29 }
 0x2aa   :  { %357 = vpow2.f32 %v288_v30 }
 0x2b4   :  { %v358_v31 = vpop.eup %357 }
 0x2b5   :  { %v290_v32 = vadd.f32 1.0, %v358_v31 }
 0x2b7   :  { %359 = vrcp.f32 %v290_v32 }
 0x2c1   :  { %v360_v33 = vpop.eup %359 }
 0x2c2   :  { %292 = vst [vmem:[#allocation5 + $0x1] sm:$0x1] %v360_v33  ;;  %v293_v34 = vsub.f32 1.0, %v360_v33 }
 0x2c4   :  { %294 = vst [vmem:[#allocation5] sm:$0x1] %v293_v34 }
 0x2c5   :  { %394 = shalt.err (!%p391_p12)
}
 0x2c6   :  { %s395_s28 = scalar_lea.hbm %s463_s2, 32 }
 0x2c7   :  { %p396_p13 = scmp.ne.s32.totalorder %s463_s2, %s395_s28  ;;  %p399_p0 = scmp.lt.u32.totalorder %s395_s28, %s463_s2 }
 0x2c9   :  { %p401_p1 = pnand %p399_p0, %p396_p13 }
 0x2cb   :  { %404 = shalt.err (!%p401_p1)
}
 0x2cc   :  { %304 = dma.vmem_to_hbm [thread:$0]  %s302_s1, 32, %s463_s2, [#allocation4]  }
 0x2cd   :  { %407 = dma.done.wait [#allocation4], 32  }
 0x2ce   :  { %408 = vsyncadd [#allocation4], 4294967264 }
 0x2cf   :  { %308 = vsyncpa [#allocation3], 1 }
 0x2d0   :  { %309 = vsyncpa [#allocation4], 1 }

</bundles_post_ra>
